<compile_context>
chip_gen: v7x
topology: tpu7x:2x2x1
jax: 0.10.0
libtpu: 0.0.40
codegen_flags: <defaults>
</compile_context>

<pallas_src>
import functools

import jax
import jax.numpy as jnp
from jax.experimental import pallas as pl
from jax.experimental.pallas import tpu as pltpu


def _cdiv(a, b):
    return (a + b - 1) // b


def _round_up(x, m):
    return _cdiv(x, m) * m


def _device_kind():
    try:
        return jax.devices()[0].device_kind.lower()
    except Exception:
        return ""


def _default_elementwise_dtype():
    # v6e / v7x have a bf16 VPU; v5e (and older) do not -> keep f32 there.
    kind = _device_kind()
    return jnp.bfloat16 if ("v6" in kind or "v7" in kind) else jnp.float32


def _num_tensorcores():
    # v7x has two TensorCores per chip; a 'parallel' grid axis shards across them.
    return 2 if "v7" in _device_kind() else 1


def _choose_tile(n, tile_cap, min_steps):
    """Balanced point-tile: big (amortize step overhead) but >= min_steps steps."""
    tile_cap = max(128, (int(tile_cap) // 128) * 128)
    max_steps = max(1, _cdiv(n, 128))                 # >= 128 points per step
    steps = max(_cdiv(n, tile_cap), min(min_steps, max_steps))
    return _round_up(_cdiv(n, steps), 128)


# ---------------------------------------------------------------------------
# Pallas kernel: full ColorRegressor forward for one tile of points
# (channels-first: channels on sublanes, points on the lane axis).
# ---------------------------------------------------------------------------
def color_regressor_kernel(
    x_ref,                       # [C, T]  bf16 input tile
    win_ref, bd0_ref,            # stacked [2H, C] bf16 (wd0_ext ; ws0p_ext), [H, 1]
    wd1_ref, bd1_ref,            # diffuse 1:  [H, H] bf16, [H, 1]
    ws0h_ref, bs0_ref,           # specular 0: [H, H] bf16, [H, 1]
    ws1_ref, bs1_ref,            # specular 1: [H, H] bf16, [H, 1]
    ws2_ref, bs2_ref,            # specular 2: [Do, H] bf16, [Do, 1] f32
    o_ref,                       # [Do, T] lane-dense output tile
):
    h_dim = bd0_ref.shape[0]
    bf16 = jnp.bfloat16

    def bias_relu(acc_f32, b_ref):
        # bias add + ReLU in the bias dtype: bf16 on v6e/v7x (bf16 VPU,
        # 2x-packed vregs), f32 on v5e.  MXU accumulation stays f32.
        a = acc_f32.astype(b_ref.dtype) + b_ref[...]
        return jnp.maximum(a, 0)

    x = x_ref[...]                                                 # bf16 [C, T]

    # Single MXU pass over x: rows [:H] = diffuse-0 pre-activation, rows [H:]
    # = specular-0 contribution of [position, view_dirs, normals] (px).
    t = jnp.dot(win_ref[...], x, preferred_element_type=jnp.float32)   # [2H, T]
    px = t[h_dim:]                                                 # f32 [H, T]

    h = bias_relu(t[:h_dim], bd0_ref)
    h = bias_relu(
        jnp.dot(wd1_ref[...], h.astype(bf16), preferred_element_type=jnp.float32),
        bd1_ref)

    # Specular layer 0: concat([h, position, view_dirs, normals]) @ W
    #   == Wh @ h + px   (px already computed from the fused matmul above)
    s = jnp.dot(ws0h_ref[...], h.astype(bf16),
                preferred_element_type=jnp.float32) + px
    s = bias_relu(s, bs0_ref)
    s = bias_relu(
        jnp.dot(ws1_ref[...], s.astype(bf16), preferred_element_type=jnp.float32),
        bs1_ref)

    out = (jnp.dot(ws2_ref[...], s.astype(bf16),
                   preferred_element_type=jnp.float32) + bs2_ref[...])

    # Sigmoid on the EUP: exp + approximate reciprocal (keeps the VALU free).
    o_ref[...] = pl.reciprocal(1.0 + jnp.exp(-out), approx=True).astype(o_ref.dtype)


# ---------------------------------------------------------------------------
# Wrapper: layout plumbing (channels-first slab, fused weight prep, BlockSpecs).
# ---------------------------------------------------------------------------
def color_regressor_forward(points, view_dirs, normals, feature_vectors, params,
                            position=None, tile_n=8192,
                            out_dtype=jnp.bfloat16, channels_first_out=False,
                            elementwise_dtype=None, rendering_input_cf=None):
    has_pos = position is not None
    bf16 = jnp.bfloat16
    f32 = jnp.float32

    # mode == 'idr': one channels-first bf16 slab [C, N] (points on the lane
    # axis -> contiguous HBM reads, lane-dense VMEM blocks).  Callers that keep
    # activations channels-first upstream can pass `rendering_input_cf`
    # (= concat([points, view, normals, features(, position)]).T) and skip
    # this single wrapper pass entirely.
    if rendering_input_cf is None:
        parts = [points, view_dirs, normals, feature_vectors]
        if has_pos:
            parts = parts + [position]
        x_cf = jnp.concatenate([p.T for p in parts], axis=0).astype(bf16)
    else:
        x_cf = rendering_input_cf.astype(bf16)
    c_total, n = x_cf.shape
    d_in = c_total - (3 if has_pos else 0)

    h_dim = params["wd0"].shape[0]
    d_out = params["ws2"].shape[0]
    ew_dtype = (_default_elementwise_dtype()
                if elementwise_dtype is None else elementwise_dtype)

    # --- kernel-ready weights (PyTorch layout W[out, in]).
    # Stack wd0 (zero-extended over the position rows) with the specular-0 pvn
    # weight scattered into input-channel layout -> ONE [2H, C] matmul on x.
    wd0_ext = jnp.zeros((h_dim, c_total), f32).at[:, :d_in].set(
        params["wd0"].astype(f32))
    ws0 = params["ws0"].astype(f32)
    ws0h = ws0[:, :h_dim]
    ws0p = ws0[:, h_dim:]                       # [H, 9]: [position, view, normal]
    ws0p_ext = jnp.zeros((h_dim, c_total), f32)
    if has_pos:
        ws0p_ext = ws0p_ext.at[:, d_in:d_in + 3].set(ws0p[:, 0:3])   # position rows
        ws0p_ext = ws0p_ext.at[:, 3:9].set(ws0p[:, 3:9])             # view/normal rows
    else:
        ws0p_ext = ws0p_ext.at[:, 0:9].set(ws0p)                     # position == points
    w_in = jnp.concatenate([wd0_ext, ws0p_ext], axis=0).astype(bf16)  # [2H, C]

    weights = [
        w_in,
        params["bd0"].reshape(h_dim, 1).astype(ew_dtype),
        params["wd1"].astype(bf16),
        params["bd1"].reshape(h_dim, 1).astype(ew_dtype),
        ws0h.astype(bf16),
        params["bs0"].reshape(h_dim, 1).astype(ew_dtype),
        params["ws1"].astype(bf16),
        params["bs1"].reshape(h_dim, 1).astype(ew_dtype),
        params["ws2"].astype(bf16),
        params["bs2"].reshape(d_out, 1).astype(f32),
    ]

    # --- tile selection: big balanced tiles, >= 2 grid steps per TensorCore.
    tile = _choose_tile(n, tile_n, 2 * _num_tensorcores())
    grid = _cdiv(n, tile)          # ragged edge is masked by Pallas; no jnp.pad

    # Weight/bias blocks are grid-invariant (index_map -> (0, 0)): fetched once.
    full_spec = lambda a: pl.BlockSpec(a.shape, lambda i: (0, 0))
    grid_spec = pltpu.PrefetchScalarGridSpec(
        num_scalar_prefetch=0,
        grid=(grid,),
        in_specs=[pl.BlockSpec((c_total, tile), lambda i: (0, i))]
                 + [full_spec(w) for w in weights],
        out_specs=pl.BlockSpec((d_out, tile), lambda i: (0, i)),
    )

    n_work = grid * tile
    flops_per_pt = 2 * (2 * h_dim * c_total + 3 * h_dim * h_dim + d_out * h_dim)
    cost = pl.CostEstimate(
        flops=int(flops_per_pt * n_work),
        transcendentals=int(2 * d_out * n_work),
        bytes_accessed=int(c_total * n * 2
                           + d_out * n * jnp.dtype(out_dtype).itemsize
                           + sum(int(w.size) * w.dtype.itemsize for w in weights)),
    )

    out_cf = pl.pallas_call(
        color_regressor_kernel,
        out_shape=jax.ShapeDtypeStruct((d_out, n), out_dtype),
        grid_spec=grid_spec,
        compiler_params=pltpu.CompilerParams(dimension_semantics=("parallel",)),
        cost_estimate=cost,
    )(x_cf, *weights)

    # [d_out, N] lane-dense slab, or back to the module's [N, d_out] layout.
    return out_cf if channels_first_out else out_cf.T


# ---------------------------------------------------------------------------
# Deterministic parameter init (weight_norm: W = g * v / ||v||, PyTorch layout).
# ---------------------------------------------------------------------------
def _wn_linear(key, fan_in, fan_out):
    k1, k2, k3 = jax.random.split(key, 3)
    v = jax.random.normal(k1, (fan_out, fan_in), dtype=jnp.float32) * 0.2
    g = jax.random.uniform(k2, (fan_out, 1), minval=0.5, maxval=1.5,
                           dtype=jnp.float32)
    w = g * v / jnp.linalg.norm(v, axis=1, keepdims=True)   # [out, in]
    b = jax.random.normal(k3, (fan_out,), dtype=jnp.float32) * 0.05
    return w, b


def init_params(key, d_in, d_out, dims, num_diff_layers=3):
    dims_diff = [d_in] + dims[:num_diff_layers]
    dims_spec = [dims[num_diff_layers - 1] + 9] + dims[num_diff_layers:] + [d_out]
    keys = jax.random.split(key, 8)
    wd0, bd0 = _wn_linear(keys[0], dims_diff[0], dims_diff[1])
    wd1, bd1 = _wn_linear(keys[1], dims_diff[1], dims_diff[2])
    ws0, bs0 = _wn_linear(keys[2], dims_spec[0], dims_spec[1])
    ws1, bs1 = _wn_linear(keys[3], dims_spec[1], dims_spec[2])
    ws2, bs2 = _wn_linear(keys[4], dims_spec[2], dims_spec[3])
    return dict(wd0=wd0, bd0=bd0, wd1=wd1, bd1=bd1, ws0=ws0, bs0=bs0,
                ws1=ws1, bs1=bs1, ws2=ws2, bs2=bs2)


# ---------------------------------------------------------------------------
# Pure-JAX reference (mirrors the PyTorch forward) for a correctness check.
# ---------------------------------------------------------------------------
def reference_forward(points, view_dirs, normals, feature_vectors, params,
                      position=None):
    if position is None:
        position = points
    x = jnp.concatenate([points, view_dirs, normals, feature_vectors], axis=-1)
    x = jnp.maximum(x @ params["wd0"].T + params["bd0"], 0.0)
    x = jnp.maximum(x @ params["wd1"].T + params["bd1"], 0.0)
    x = jnp.concatenate([x, position, view_dirs, normals], axis=-1)
    x = jnp.maximum(x @ params["ws0"].T + params["bs0"], 0.0)
    x = jnp.maximum(x @ params["ws1"].T + params["bs1"], 0.0)
    x = x @ params["ws2"].T + params["bs2"]
    return jax.nn.sigmoid(x)


if __name__ == "__main__":
    # Small synthetic config: d_in = 9 + feat_dim = 32, dims = [32]*5, d_out = 3.
    FEAT, D_IN, D_OUT = 23, 32, 3
    DIMS = [32, 32, 32, 32, 32]
    N = 1000   # not a multiple of 128 -> exercises the ragged (masked) edge block

    key = jax.random.PRNGKey(0)
    kp, kv, kn, kf, kq, kw = jax.random.split(key, 6)
    points = jax.random.normal(kp, (N, 3), dtype=jnp.float32)
    view_dirs = jax.random.normal(kv, (N, 3), dtype=jnp.float32)
    normals = jax.random.normal(kn, (N, 3), dtype=jnp.float32)
    feature_vectors = jax.random.normal(kf, (N, FEAT), dtype=jnp.float32)
    position = jax.random.normal(kq, (N, 3), dtype=jnp.float32)

    params = init_params(kw, D_IN, D_OUT, DIMS, num_diff_layers=3)

    fwd = jax.jit(functools.partial(color_regressor_forward, tile_n=8192))

    # position = None path.
    out = jax.block_until_ready(
        fwd(points, view_dirs, normals, feature_vectors, params))
    ref = reference_forward(points, view_dirs, normals, feature_vectors, params)
    assert out.shape == (N, D_OUT)
    # bf16 matmuls/intermediates/output + approximate reciprocal -> loose tol.
    err = float(jnp.max(jnp.abs(out.astype(jnp.float32) - ref)))
    assert err < 4e-2, f"position=None mismatch vs reference (max abs err {err})"

    # Explicit-position path (verifies the pvn weight scatter with has_pos=True).
    out_p = jax.block_until_ready(
        fwd(points, view_dirs, normals, feature_vectors, params, position))
    ref_p = reference_forward(points, view_dirs, normals, feature_vectors, params,
                              position=position)
    err_p = float(jnp.max(jnp.abs(out_p.astype(jnp.float32) - ref_p)))
    assert err_p < 4e-2, f"explicit-position mismatch vs reference (max abs err {err_p})"

    print("KERNEL_OK")
</pallas_src>

<mosaic_0001>
module attributes {stable_mosaic.version = 11 : i64} {
  func.func @color_regressor_kernel(%arg0: i32, %arg1: memref<32x512xbf16, #tpu.memory_space<vmem>>, %arg2: memref<64x32xbf16, #tpu.memory_space<vmem>>, %arg3: memref<32x1xf32, #tpu.memory_space<vmem>>, %arg4: memref<32x32xbf16, #tpu.memory_space<vmem>>, %arg5: memref<32x1xf32, #tpu.memory_space<vmem>>, %arg6: memref<32x32xbf16, #tpu.memory_space<vmem>>, %arg7: memref<32x1xf32, #tpu.memory_space<vmem>>, %arg8: memref<32x32xbf16, #tpu.memory_space<vmem>>, %arg9: memref<32x1xf32, #tpu.memory_space<vmem>>, %arg10: memref<3x32xbf16, #tpu.memory_space<vmem>>, %arg11: memref<3x1xf32, #tpu.memory_space<vmem>>, %arg12: memref<3x512xbf16, #tpu.memory_space<vmem>>) attributes {dimension_semantics = [#tpu.dimension_semantics<parallel>], iteration_bounds = array<i64: 2>, scalar_prefetch = 0 : i64, scratch_operands = 0 : i64, tpu.core_type = #tpu.core_type<tc>, window_params = [{transform_indices = @transform_0, window_bounds = array<i64: 32, 512>}, {pipeline_mode = #tpu.pipeline_mode<synchronous>, transform_indices = @transform_1, window_bounds = array<i64: 64, 32>}, {pipeline_mode = #tpu.pipeline_mode<synchronous>, transform_indices = @transform_2, window_bounds = array<i64: 32, 1>}, {pipeline_mode = #tpu.pipeline_mode<synchronous>, transform_indices = @transform_3, window_bounds = array<i64: 32, 32>}, {pipeline_mode = #tpu.pipeline_mode<synchronous>, transform_indices = @transform_4, window_bounds = array<i64: 32, 1>}, {pipeline_mode = #tpu.pipeline_mode<synchronous>, transform_indices = @transform_5, window_bounds = array<i64: 32, 32>}, {pipeline_mode = #tpu.pipeline_mode<synchronous>, transform_indices = @transform_6, window_bounds = array<i64: 32, 1>}, {pipeline_mode = #tpu.pipeline_mode<synchronous>, transform_indices = @transform_7, window_bounds = array<i64: 32, 32>}, {pipeline_mode = #tpu.pipeline_mode<synchronous>, transform_indices = @transform_8, window_bounds = array<i64: 32, 1>}, {pipeline_mode = #tpu.pipeline_mode<synchronous>, transform_indices = @transform_9, window_bounds = array<i64: 3, 32>}, {pipeline_mode = #tpu.pipeline_mode<synchronous>, transform_indices = @transform_10, window_bounds = array<i64: 3, 1>}, {transform_indices = @transform_11, window_bounds = array<i64: 3, 512>}]} {
    %c0 = arith.constant 0 : index
    %c0_0 = arith.constant 0 : index
    %0 = vector.load %arg1[%c0, %c0_0] : memref<32x512xbf16, #tpu.memory_space<vmem>>, vector<32x512xbf16>
    %c0_1 = arith.constant 0 : index
    %c0_2 = arith.constant 0 : index
    %1 = vector.load %arg2[%c0_1, %c0_2] : memref<64x32xbf16, #tpu.memory_space<vmem>>, vector<64x32xbf16>
    %cst = arith.constant dense<0.000000e+00> : vector<64x512xf32>
    %2 = tpu.matmul %1, %0, %cst {dimension_numbers = #tpu.dot_dimension_numbers<[1], [0], [0], [1], [0, 0, 1, 1], [], []>} : vector<64x32xbf16>, vector<32x512xbf16>, vector<64x512xf32> -> vector<64x512xf32>
    %3 = vector.extract_strided_slice %2 {offsets = [32, 0], sizes = [32, 512], strides = [1, 1]} : vector<64x512xf32> to vector<32x512xf32>
    %4 = vector.extract_strided_slice %2 {offsets = [0, 0], sizes = [32, 512], strides = [1, 1]} : vector<64x512xf32> to vector<32x512xf32>
    %c0_3 = arith.constant 0 : index
    %c0_4 = arith.constant 0 : index
    %5 = vector.load %arg3[%c0_3, %c0_4] : memref<32x1xf32, #tpu.memory_space<vmem>>, vector<32x1xf32>
    %6 = vector.broadcast %5 : vector<32x1xf32> to vector<32x512xf32>
    %7 = arith.addf %4, %6 : vector<32x512xf32>
    %cst_5 = arith.constant 0.000000e+00 : f32
    %8 = vector.broadcast %cst_5 : f32 to vector<32x512xf32>
    %9 = arith.maximumf %7, %8 : vector<32x512xf32>
    %c0_6 = arith.constant 0 : index
    %c0_7 = arith.constant 0 : index
    %10 = vector.load %arg4[%c0_6, %c0_7] : memref<32x32xbf16, #tpu.memory_space<vmem>>, vector<32x32xbf16>
    %11 = arith.truncf %9 : vector<32x512xf32> to vector<32x512xbf16>
    %cst_8 = arith.constant dense<0.000000e+00> : vector<32x512xf32>
    %12 = tpu.matmul %10, %11, %cst_8 {dimension_numbers = #tpu.dot_dimension_numbers<[1], [0], [0], [1], [0, 0, 1, 1], [], []>} : vector<32x32xbf16>, vector<32x512xbf16>, vector<32x512xf32> -> vector<32x512xf32>
    %c0_9 = arith.constant 0 : index
    %c0_10 = arith.constant 0 : index
    %13 = vector.load %arg5[%c0_9, %c0_10] : memref<32x1xf32, #tpu.memory_space<vmem>>, vector<32x1xf32>
    %14 = vector.broadcast %13 : vector<32x1xf32> to vector<32x512xf32>
    %15 = arith.addf %12, %14 : vector<32x512xf32>
    %cst_11 = arith.constant 0.000000e+00 : f32
    %16 = vector.broadcast %cst_11 : f32 to vector<32x512xf32>
    %17 = arith.maximumf %15, %16 : vector<32x512xf32>
    %c0_12 = arith.constant 0 : index
    %c0_13 = arith.constant 0 : index
    %18 = vector.load %arg6[%c0_12, %c0_13] : memref<32x32xbf16, #tpu.memory_space<vmem>>, vector<32x32xbf16>
    %19 = arith.truncf %17 : vector<32x512xf32> to vector<32x512xbf16>
    %cst_14 = arith.constant dense<0.000000e+00> : vector<32x512xf32>
    %20 = tpu.matmul %18, %19, %cst_14 {dimension_numbers = #tpu.dot_dimension_numbers<[1], [0], [0], [1], [0, 0, 1, 1], [], []>} : vector<32x32xbf16>, vector<32x512xbf16>, vector<32x512xf32> -> vector<32x512xf32>
    %21 = arith.addf %20, %3 : vector<32x512xf32>
    %c0_15 = arith.constant 0 : index
    %c0_16 = arith.constant 0 : index
    %22 = vector.load %arg7[%c0_15, %c0_16] : memref<32x1xf32, #tpu.memory_space<vmem>>, vector<32x1xf32>
    %23 = vector.broadcast %22 : vector<32x1xf32> to vector<32x512xf32>
    %24 = arith.addf %21, %23 : vector<32x512xf32>
    %cst_17 = arith.constant 0.000000e+00 : f32
    %25 = vector.broadcast %cst_17 : f32 to vector<32x512xf32>
    %26 = arith.maximumf %24, %25 : vector<32x512xf32>
    %c0_18 = arith.constant 0 : index
    %c0_19 = arith.constant 0 : index
    %27 = vector.load %arg8[%c0_18, %c0_19] : memref<32x32xbf16, #tpu.memory_space<vmem>>, vector<32x32xbf16>
    %28 = arith.truncf %26 : vector<32x512xf32> to vector<32x512xbf16>
    %cst_20 = arith.constant dense<0.000000e+00> : vector<32x512xf32>
    %29 = tpu.matmul %27, %28, %cst_20 {dimension_numbers = #tpu.dot_dimension_numbers<[1], [0], [0], [1], [0, 0, 1, 1], [], []>} : vector<32x32xbf16>, vector<32x512xbf16>, vector<32x512xf32> -> vector<32x512xf32>
    %c0_21 = arith.constant 0 : index
    %c0_22 = arith.constant 0 : index
    %30 = vector.load %arg9[%c0_21, %c0_22] : memref<32x1xf32, #tpu.memory_space<vmem>>, vector<32x1xf32>
    %31 = vector.broadcast %30 : vector<32x1xf32> to vector<32x512xf32>
    %32 = arith.addf %29, %31 : vector<32x512xf32>
    %cst_23 = arith.constant 0.000000e+00 : f32
    %33 = vector.broadcast %cst_23 : f32 to vector<32x512xf32>
    %34 = arith.maximumf %32, %33 : vector<32x512xf32>
    %c0_24 = arith.constant 0 : index
    %c0_25 = arith.constant 0 : index
    %35 = vector.load %arg10[%c0_24, %c0_25] : memref<3x32xbf16, #tpu.memory_space<vmem>>, vector<3x32xbf16>
    %36 = arith.truncf %34 : vector<32x512xf32> to vector<32x512xbf16>
    %cst_26 = arith.constant dense<0.000000e+00> : vector<3x512xf32>
    %37 = tpu.matmul %35, %36, %cst_26 {dimension_numbers = #tpu.dot_dimension_numbers<[1], [0], [0], [1], [0, 0, 1, 1], [], []>} : vector<3x32xbf16>, vector<32x512xbf16>, vector<3x512xf32> -> vector<3x512xf32>
    %c0_27 = arith.constant 0 : index
    %c0_28 = arith.constant 0 : index
    %38 = vector.load %arg11[%c0_27, %c0_28] : memref<3x1xf32, #tpu.memory_space<vmem>>, vector<3x1xf32>
    %39 = vector.broadcast %38 : vector<3x1xf32> to vector<3x512xf32>
    %40 = arith.addf %37, %39 : vector<3x512xf32>
    %cst_29 = arith.constant 0.000000e+00 : f32
    %41 = vector.broadcast %cst_29 : f32 to vector<3x512xf32>
    %42 = arith.subf %41, %40 : vector<3x512xf32>
    %43 = math.exp %42 : vector<3x512xf32>
    %cst_30 = arith.constant 1.000000e+00 : f32
    %44 = vector.broadcast %cst_30 : f32 to vector<3x512xf32>
    %45 = arith.addf %44, %43 : vector<3x512xf32>
    %46 = tpu.reciprocal %45 {approx = true} : vector<3x512xf32> -> vector<3x512xf32>
    %47 = arith.truncf %46 : vector<3x512xf32> to vector<3x512xbf16>
    %c0_31 = arith.constant 0 : index
    %c0_32 = arith.constant 0 : index
    %48 = vector.load %arg12[%c0_31, %c0_32] : memref<3x512xbf16, #tpu.memory_space<vmem>>, vector<3x512xbf16>
    tpu.vector_store %arg12[%c0_31, %c0_32], %47 {strides = array<i32>} : memref<3x512xbf16, #tpu.memory_space<vmem>>, vector<3x512xbf16>,
    return
  }
  func.func @transform_0(%arg0: i32) -> (i32, i32) {
    %c0_i32 = arith.constant 0 : i32
    %c0_i32_0 = arith.constant 0 : i32
    return %c0_i32, %arg0 : i32, i32
  }
  func.func @transform_1(%arg0: i32) -> (i32, i32) {
    %c0_i32 = arith.constant 0 : i32
    %c0_i32_0 = arith.constant 0 : i32
    %c0_i32_1 = arith.constant 0 : i32
    return %c0_i32, %c0_i32_0 : i32, i32
  }
  func.func @transform_2(%arg0: i32) -> (i32, i32) {
    %c0_i32 = arith.constant 0 : i32
    %c0_i32_0 = arith.constant 0 : i32
    %c0_i32_1 = arith.constant 0 : i32
    return %c0_i32, %c0_i32_0 : i32, i32
  }
  func.func @transform_3(%arg0: i32) -> (i32, i32) {
    %c0_i32 = arith.constant 0 : i32
    %c0_i32_0 = arith.constant 0 : i32
    %c0_i32_1 = arith.constant 0 : i32
    return %c0_i32, %c0_i32_0 : i32, i32
  }
  func.func @transform_4(%arg0: i32) -> (i32, i32) {
    %c0_i32 = arith.constant 0 : i32
    %c0_i32_0 = arith.constant 0 : i32
    %c0_i32_1 = arith.constant 0 : i32
    return %c0_i32, %c0_i32_0 : i32, i32
  }
  func.func @transform_5(%arg0: i32) -> (i32, i32) {
    %c0_i32 = arith.constant 0 : i32
    %c0_i32_0 = arith.constant 0 : i32
    %c0_i32_1 = arith.constant 0 : i32
    return %c0_i32, %c0_i32_0 : i32, i32
  }
  func.func @transform_6(%arg0: i32) -> (i32, i32) {
    %c0_i32 = arith.constant 0 : i32
    %c0_i32_0 = arith.constant 0 : i32
    %c0_i32_1 = arith.constant 0 : i32
    return %c0_i32, %c0_i32_0 : i32, i32
  }
  func.func @transform_7(%arg0: i32) -> (i32, i32) {
    %c0_i32 = arith.constant 0 : i32
    %c0_i32_0 = arith.constant 0 : i32
    %c0_i32_1 = arith.constant 0 : i32
    return %c0_i32, %c0_i32_0 : i32, i32
  }
  func.func @transform_8(%arg0: i32) -> (i32, i32) {
    %c0_i32 = arith.constant 0 : i32
    %c0_i32_0 = arith.constant 0 : i32
    %c0_i32_1 = arith.constant 0 : i32
    return %c0_i32, %c0_i32_0 : i32, i32
  }
  func.func @transform_9(%arg0: i32) -> (i32, i32) {
    %c0_i32 = arith.constant 0 : i32
    %c0_i32_0 = arith.constant 0 : i32
    %c0_i32_1 = arith.constant 0 : i32
    return %c0_i32, %c0_i32_0 : i32, i32
  }
  func.func @transform_10(%arg0: i32) -> (i32, i32) {
    %c0_i32 = arith.constant 0 : i32
    %c0_i32_0 = arith.constant 0 : i32
    %c0_i32_1 = arith.constant 0 : i32
    return %c0_i32, %c0_i32_0 : i32, i32
  }
  func.func @transform_11(%arg0: i32) -> (i32, i32) {
    %c0_i32 = arith.constant 0 : i32
    %c0_i32_0 = arith.constant 0 : i32
    return %c0_i32, %arg0 : i32, i32
  }
}

</mosaic_0001>

<bundles_post_ra>
// kernel: color_regressor_forward.1
= control target key start
LH: loop header
LB: loop body
LE: loop exit
PB: predicated region body
PF: predicated region fallthrough
CT: control target
= control target key end

     0   :  { %s2029_s0 = inlined_call_operand.vmem [shape: bf16[32,1000], index: 0, kind: input, shape index: {}]   ;;  %s2030_s1 = inlined_call_operand.vmem [shape: bf16[64,32], index: 1, kind: input, shape index: {}]   ;;  %s2031_s2 = inlined_call_operand.vmem [shape: f32[32,1], index: 2, kind: input, shape index: {}]   ;;  %s2032_s3 = inlined_call_operand.vmem [shape: bf16[32,32], index: 3, kind: input, shape index: {}]   ;;  %s2033_s4 = inlined_call_operand.vmem [shape: f32[32,1], index: 4, kind: input, shape index: {}]   ;;  %s2034_s5 = inlined_call_operand.vmem [shape: bf16[32,32], index: 5, kind: input, shape index: {}]   ;;  %s2035_s6 = inlined_call_operand.vmem [shape: f32[32,1], index: 6, kind: input, shape index: {}]   ;;  %s2036_s7 = inlined_call_operand.vmem [shape: bf16[32,32], index: 7, kind: input, shape index: {}]   ;;  %s2037_s8 = inlined_call_operand.vmem [shape: f32[32,1], index: 8, kind: input, shape index: {}]   ;;  %s2038_s9 = inlined_call_operand.vmem [shape: bf16[3,32], index: 9, kind: input, shape index: {}]   ;;  %s2039_s10 = inlined_call_operand.vmem [shape: f32[3,1], index: 10, kind: input, shape index: {}]   ;;  %s2040_s11 = inlined_call_operand.hbm [shape: bf16[3,1000], index: 11, kind: output, shape index: {}]  }
   0x1   :  { %2042 = sst [smem:[#allocation6_spill]] %s2029_s0 }
   0x2   :  { %16 = vsyncpa [#allocation4], 0 }
   0x3   :  { %18 = vsyncpa [#allocation4 + $0x1], 0  ;;  %s1777_s17 = smov 0   ;;  %s1779_s18 = smov 0  }
   0x4   :  { %s1781_s19 = smov 0   ;;  %s1783_s20 = smov 0  }
   0x5 LB: > { %s2041_s21 = sadd.s32 4294967295, %s1712_s20   ;;  %s1495_s22 = sadd.s32 4294967294, %s1712_s20   ;;  %s1712_s20 = sphi %s1783_s20, %s2054_s20   ;;  %s1708_s19 = sphi %s1781_s19, %s2053_s19   ;;  %s1704_s18 = sphi %s1779_s18, %s2052_s18   ;;  %s1700_s17 = sphi %s1777_s17, %s2051_s17  }
   0x6   : > { %s1800_s23 = sadd.s32 1, %s1712_s20   ;;  %s31_s24 = sadd.s32 1, %s1708_s19 }
   0x7   : > { %s28_s25 = ssub.s32 %s1712_s20, %s1800_s23  ;;  %p38_p0 = scmp.ne.s32.totalorder %s1708_s19, %s1704_s18 }
   0x8   : > { %p29_p1 = scmp.eq.s32.totalorder %s28_s25, 0  ;;  %p39_p2 = scmp.eq.s32.totalorder %s1712_s20, 0 }
   0x9   : > { %p278_p3 = scmp.eq.s32.totalorder %s2041_s21, 1  ;;  %p283_p4 = scmp.ne.s32.totalorder %s1704_s18, %s1700_s17 }
   0xa   : > { %s1813_s26 = scalar_select %p29_p1, %s1708_s19, %s31_s24  }
   0xb   : > { %p40_p5 = por %p39_p2, %p38_p0  ;;  %p1815_p6 = por %p278_p3, %p38_p0 }
   0xc   : > { %p284_p7 = scmp.eq.s32.totalorder %s1495_s22, 1  ;;  %p1497_p9 = scmp.ge.s32.totalorder %s1712_s20, 2 }
   0xe   : > { %p1819_p8 = por %p284_p7, %p283_p4  ;;  %330 = sbr.rel (%p1497_p9) target bundleno = 35 (0x23), region = 56 }
  0x15   : > { %333 = sbr.rel (!%p40_p5) target bundleno = 35 (0x23), region = 60  ;;  %s335_s29 = sand.u32 (%p40_p5), 1, %s1708_s19  }
  0x16   : > { %s1551_s30 = sshll.u32 (%p40_p5), %s1712_s20, 4  ;;  %s1498_s12 = sshll.u32 (%p40_p5), %s335_s29, 6 }
  0x17   : > { %s2045_s0 = sld [smem:[#allocation6_spill]] (%p40_p5)  ;;  %s337_s16 = scalar_lea.vmem (%p40_p5), [#allocation2], %s1498_s12 }
  0x1d   : > { %s340_s15 = scalar_lea.vmem %s2045_s0, %s1551_s30 }
  0x1e   : > { %v353_v0 = vld [vmem:[%s340_s15] sm:$0xff]  ;;  %v355_v1 = vld [vmem:[%s340_s15 + $0x8] sm:$0xff] }
  0x1f   : > { %v357_v2 = vld [vmem:[%s340_s15 + $0x20] sm:$0xff]  ;;  %354 = vst [vmem:[%s337_s16] sm:$0xff] %v353_v0  ;;  %356 = vst [vmem:[%s337_s16 + $0x8] sm:$0xff] %v355_v1  ;;  %v359_v3 = vld [vmem:[%s340_s15 + $0x28] sm:$0xff] }
  0x20   : > { %358 = vst [vmem:[%s337_s16 + $0x10] sm:$0xff] %v357_v2  ;;  %v361_v4 = vld [vmem:[%s340_s15 + $0x40] sm:$0xff]  ;;  %v363_v5 = vld [vmem:[%s340_s15 + $0x48] sm:$0xff]  ;;  %360 = vst [vmem:[%s337_s16 + $0x18] sm:$0xff] %v359_v3 }
  0x21   : > { %362 = vst [vmem:[%s337_s16 + $0x20] sm:$0xff] %v361_v4  ;;  %364 = vst [vmem:[%s337_s16 + $0x28] sm:$0xff] %v363_v5  ;;  %v365_v6 = vld [vmem:[%s340_s15 + $0x60] sm:$0xff]  ;;  %v367_v7 = vld [vmem:[%s340_s15 + $0x68] sm:$0xff] }
  0x22   : > { %366 = vst [vmem:[%s337_s16 + $0x30] sm:$0xff] %v365_v6  ;;  %368 = vst [vmem:[%s337_s16 + $0x38] sm:$0xff] %v367_v7 }
  0x23 PF: > { %p1501_p10 = scmp.ge.s32.totalorder %s1712_s20, 1  ;;  %p373_p11 = scmp.lt.s32.totalorder %s1712_s20, 3 }
  0x25   : > { %p374_p12 = pnand %p1501_p10, %p373_p11 }
  0x26   : > { %s1834_s22 = sand.u32 (!%p374_p12), 1, %s1704_s18   ;;  %v1714_v8 = vmov (!%p374_p12), 0   ;;  %v657_v9 = vld [vmem:[%s2031_s2] sm:$0xff] (!%p374_p12)  ;;  %v658_v11 = vld [vmem:[%s2031_s2 + $0x8] sm:$0xff] (!%p374_p12)  ;;  %v659_v20 = vld [vmem:[%s2031_s2 + $0x10] sm:$0xff] (!%p374_p12)  ;;  %vm498_vm0 = vcmask (!%p374_p12), 261120  }
  0x27   : > { %377 = sbr.rel (%p374_p12) target bundleno = 1248 (0x4e0), region = 83  ;;  %s1502_s24 = sshll.u32 (!%p374_p12), %s1834_s22, 6  ;;  %543 = vmatprep.mubr.bf16.mxu0 (!%p374_p12), %v1714_v8  ;;  %616 = vmatprep.mubr.bf16.mxu1 (!%p374_p12), %v1714_v8  ;;  %v725_v19 = vld [vmem:[%s2033_s4] sm:$0xff] (!%p374_p12)  ;;  %v727_v22 = vld [vmem:[%s2033_s4 + $0x10] sm:$0xff] (!%p374_p12)  ;;  %v660_v23 = vld [vmem:[%s2031_s2 + $0x18] sm:$0xff] (!%p374_p12)  ;;  %vm1397_vm1 = vcmask (!%p374_p12), 1041408  }
  0x28   : > { %1610 = vset.pattern.permute.xlu0 (!%p374_p12), %v1714_v8  ;;  %1611 = vset.pattern.permute.xlu1 (!%p374_p12), %v1714_v8  ;;  %s382_s30 = scalar_lea.vmem (!%p374_p12), [#allocation2], %s1502_s24  ;;  %v1624_v21 = vld [vmem:[%s2030_s1] sm:$0xff] (!%p374_p12)   ;;  %v726_v25 = vld [vmem:[%s2033_s4 + $0x8] sm:$0xff] (!%p374_p12)  ;;  %v1023_v27 = vld [vmem:[%s2035_s6 + $0x10] sm:$0xff] (!%p374_p12)  ;;  %vm1398_vm2 = vsmask.f32 (!%p374_p12), 1280 }
  0x29   : > { %v1612_v10 = vld [vmem:[%s382_s30 + $0x4] ss:$16 sps:$4 sm:$0xff] (!%p374_p12)   ;;  %663 = vperm.xlu0 (!%p374_p12), %1610, %v657_v9   ;;  %v1614_v12 = vld [vmem:[%s382_s30 + $0xc] ss:$16 sps:$4 sm:$0xff] (!%p374_p12)   ;;  %v1616_v13 = vld [vmem:[%s382_s30] ss:$16 sps:$4 sm:$0xff] (!%p374_p12)   ;;  %673 = vperm.xlu1 (!%p374_p12), %1611, %v659_v20  }
  0x2a   : > { %511 = vmatprep.subr.bf16.mxu0 (!%p374_p12), %v1612_v10  ;;  %v1617_v14 = vld [vmem:[%s382_s30 + $0x8] ss:$16 sps:$4 sm:$0xff] (!%p374_p12)   ;;  %584 = vmatprep.subr.bf16.mxu1 (!%p374_p12), %v1614_v12  ;;  %v1618_v15 = vld [vmem:[%s382_s30 + $0x24] ss:$16 sps:$4 sm:$0xff] (!%p374_p12)   ;;  %v1620_v16 = vld [vmem:[%s382_s30 + $0x2c] ss:$16 sps:$4 sm:$0xff] (!%p374_p12)  }
  0x2b   : > { %512 = vmatpush1.bf16.msra.mxu0 (!%p374_p12), %v1616_v13  ;;  %585 = vmatpush1.bf16.msra.mxu1 (!%p374_p12), %v1617_v14  ;;  %v1622_v17 = vld [vmem:[%s382_s30 + $0x20] ss:$16 sps:$4 sm:$0xff] (!%p374_p12)   ;;  %v1623_v18 = vld [vmem:[%s382_s30 + $0x28] ss:$16 sps:$4 sm:$0xff] (!%p374_p12)   ;;  %vm1400_vm3 = vcmask (!%p374_p12), 1043458   ;;  %vm1967_vm5 = vmand (!%p374_p12), %vm1397_vm1, %vm1398_vm2  ;;  %vm1404_vm7 = vcmask (!%p374_p12), 1045508  }
  0x2c   : > { %513 = vmatprep.subr.bf16.mxu0 (!%p374_p12), %v1618_v15  ;;  %586 = vmatprep.subr.bf16.mxu1 (!%p374_p12), %v1620_v16  ;;  %v1021_v24 = vld [vmem:[%s2035_s6] sm:$0xff] (!%p374_p12)  ;;  %v1625_v26 = vld [vmem:[%s2030_s1 + $0x8] sm:$0xff] (!%p374_p12)   ;;  %v728_v28 = vld [vmem:[%s2033_s4 + $0x18] sm:$0xff] (!%p374_p12)  ;;  %vm1401_vm4 = vsmask.f32 (!%p374_p12), 3328  ;;  %s1503_s24 = sshll.u32 (!%p374_p12), %s1834_s22, 3 }
  0x2d   : > { %668 = vperm.xlu0 (!%p374_p12), %1610, %v658_v11   ;;  %678 = vperm.xlu1 (!%p374_p12), %1611, %v660_v23   ;;  %v1089_v29 = vld [vmem:[%s2037_s8] sm:$0xff] (!%p374_p12)  ;;  %v1022_v30 = vld [vmem:[%s2035_s6 + $0x8] sm:$0xff] (!%p374_p12)  ;;  %v1091_v31 = vld [vmem:[%s2037_s8 + $0x10] sm:$0xff] (!%p374_p12)  ;;  %vm1405_vm8 = vsmask.f32 (!%p374_p12), 5376  ;;  %vm1408_vm11 = vcmask (!%p374_p12), 1047558  }
  0x2e   : > { %v1024_v32 = vld [vmem:[%s2035_s6 + $0x18] sm:$0xff]  ;;  %v1260_v33 = vld [vmem:[%s2039_s10] sm:$0x7]  ;;  %v1090_v34 = vld [vmem:[%s2037_s8 + $0x8] sm:$0xff]  ;;  %vm1409_vm12 = vsmask.f32 7424 }
  0x2f   : > { %514 = vmatpush1.bf16.msra.mxu0 %v1622_v17  ;;  %587 = vmatpush1.bf16.msra.mxu1 %v1623_v18  ;;  %v1092_v35 = vld [vmem:[%s2037_s8 + $0x18] sm:$0xff]  ;;  %v1626_v36 = vld [vmem:[%s2030_s1 + $0x10] sm:$0xff]   ;;  %vm1971_vm6 = vmand %vm1400_vm3, %vm1401_vm4  ;;  %s2050_s25 = sadd.s32 4294967295, %s1712_s20   ;;  %s418_s29 = scalar_lea.vmem [#allocation3], %s1503_s24 }
  0x30   : > { %v1627_v37 = vld [vmem:[%s2030_s1 + $0x18] sm:$0xff]   ;;  %vm1403_vm9 = vmor %vm1971_vm6, %vm1967_vm5  ;;  %s1552_s21 = sshll.u32 %s2050_s25, 7  ;;  %s1430_s30 = sshll.u32 %s418_s29, 4  ;;  %s1987_s30 = int_to_ptr.vmem [resolvable:$true] %s1430_s30 }
  0x31   : > { %731 = vperm.xlu0 %1610, %v725_v19   ;;  %736 = vperm.xlu1 %1611, %v726_v25   ;;  %vm1406_vm10 = vmand %vm1404_vm7, %vm1405_vm8  ;;  %s1985_s14 = scalar_lea.hbm %s2040_s11, %s1552_s21  ;;  %s1416_s15 = scalar_lea.sflag [#allocation4], %s1834_s22 }
  0x32   : > { %1516 = vmatmul.mubr.msk.bf16.vlgmr.msra.gmra.mrb[0].mxu0 %vm498_vm0, %v1624_v21  ;;  %1520 = vmatmul.mubr.msk.bf16.vlgmr.msra.gmra.mrb[0].mxu1 %vm498_vm0, %v1624_v21  ;;  %vm1407_vm13 = vmor %vm1406_vm10, %vm1403_vm9  ;;  %s1650_s16 = scalar_lea.vmem %s1987_s30, 128  ;;  %s1716_s24 = smov [#allocation3]  }
  0x33   : > { %553 = vmatprep.mubr.bf16.mxu0 %v1714_v8  ;;  %626 = vmatprep.mubr.bf16.mxu1 %v1714_v8  ;;  %vm1410_vm14 = vmand %vm1408_vm11, %vm1409_vm12  ;;  %p1651_p13 = scmp.ne.s32.totalorder %s1987_s30, %s1650_s16  ;;  %s1654_s25 = sshll.u32 %s1716_s24, 4  ;;  %s1655_s25 = int_to_ptr.vmem [resolvable:$false] %s1654_s25 }
  0x34   : > { %vm1411_vm15 = vmor %vm1410_vm14, %vm1407_vm13  ;;  %s1656_s0 = scalar_lea.vmem %s1655_s25, 256  ;;  %p1657_p2 = scmp.lt.s32.totalorder %s1987_s30, %s1655_s25 }
  0x35   : > { %741 = vperm.xlu0 %1610, %v727_v22   ;;  %746 = vperm.xlu1 %1611, %v728_v28   ;;  %p1652_p0 = pnand %p1651_p13, %p1815_p6  ;;  %p1658_p3 = scmp.lt.s32.totalorder %s1656_s0, %s1650_s16 }
  0x37   : > { %p1653_p1 = pneg %p1652_p0  ;;  %p1659_p4 = por %p1658_p3, %p1657_p2 }
  0x39   : > { %1027 = vperm.xlu0 %1610, %v1021_v24   ;;  %1032 = vperm.xlu1 %1611, %v1022_v30   ;;  %p1660_p5 = pnand %p1659_p4, %p1653_p1 }
  0x3a   : > { %1517 = vmatmul.mubr.msk.bf16.gmra.mrb[4].mxu0 %vm498_vm0, %v1625_v26  ;;  %1521 = vmatmul.mubr.msk.bf16.gmra.mrb[4].mxu1 %vm498_vm0, %v1625_v26 }
  0x3b   : > { %563 = vmatprep.mubr.bf16.mxu0 %v1714_v8  ;;  %636 = vmatprep.mubr.bf16.mxu1 %v1714_v8 }
  0x3d   : > { %1037 = vperm.xlu0 %1610, %v1023_v27   ;;  %1042 = vperm.xlu1 %1611, %v1024_v32  }
  0x41   : > { %1095 = vperm.xlu0 %1610, %v1089_v29   ;;  %1100 = vperm.xlu1 %1611, %v1090_v34  }
  0x42   : > { %1518 = vmatmul.mubr.msk.bf16.gmra.mrb[8].mxu0 %vm498_vm0, %v1626_v36  ;;  %1522 = vmatmul.mubr.msk.bf16.gmra.mrb[8].mxu1 %vm498_vm0, %v1626_v36  ;;  %v1629_v36 = vld [vmem:[%s2032_s3 + $0x8] sm:$0xff]  }
  0x43   : > { %573 = vmatprep.mubr.bf16.mxu0 %v1714_v8  ;;  %646 = vmatprep.mubr.bf16.mxu1 %v1714_v8 }
  0x45   : > { %1105 = vperm.xlu0 %1610, %v1091_v31   ;;  %1110 = vperm.xlu1 %1611, %v1092_v35   ;;  %v1628_v35 = vld [vmem:[%s2032_s3] sm:$0xff]  }
  0x49   : > { %1263 = vperm.xlu0 %1610, %v1260_v33  }
  0x4a   : > { %1519 = vmatmul.mubr.msk.bf16.gmra.mrb[12].mxu0 %vm498_vm0, %v1627_v37  ;;  %1523 = vmatmul.mubr.msk.bf16.gmra.mrb[12].mxu1 %vm498_vm0, %v1627_v37 }
  0x4b   : > { %797 = vmatprep.mubr.bf16.mxu0 %v1714_v8  ;;  %850 = vmatprep.mubr.bf16.mxu1 %v1714_v8 }
  0xa8   : > { %v664_v38 = vpop.permute.xlu0 %663  ;;  %v674_v40 = vpop.permute.xlu1 %673 }
  0xac   : > { %v669_v39 = vpop.permute.xlu0 %668  ;;  %v679_v1 = vpop.permute.xlu1 %678 }
  0xb0   : > { %v732_v37 = vpop.permute.xlu0 %731 }
 0x105   : > { %v545_v41 = vpop.f32.mrb[0].mxu0  ;;  %v618_v42 = vpop.f32.mrb[0].mxu1 }
 0x106   : > { %v681_v43 = vadd.f32 %v664_v38, %v545_v41  ;;  %v683_v44 = vadd.f32 %v664_v38, %v618_v42  ;;  %v547_v45 = vpop.f32.mrb[1].mxu0  ;;  %v620_v46 = vpop.f32.mrb[1].mxu1 }
 0x107   : > { %v682_v47 = vadd.f32 %v664_v38, %v547_v45  ;;  %v684_v48 = vadd.f32 %v664_v38, %v620_v46  ;;  %v549_v49 = vpop.f32.mrb[2].mxu0  ;;  %v622_v50 = vpop.f32.mrb[2].mxu1 }
 0x108   : > { %v685_v51 = vadd.f32 %v669_v39, %v549_v49  ;;  %v687_v52 = vadd.f32 %v669_v39, %v622_v50  ;;  %v551_v53 = vpop.f32.mrb[3].mxu0  ;;  %v624_v54 = vpop.f32.mrb[3].mxu1  ;;  %v697_v57 = vmax.f32 %v681_v43, 0.0  ;;  %v699_v58 = vmax.f32 %v683_v44, 0.0 }
 0x109   : > { %v686_v55 = vadd.f32 %v669_v39, %v551_v53  ;;  %v688_v56 = vadd.f32 %v669_v39, %v624_v54  ;;  %v698_v61 = vmax.f32 %v682_v47, 0.0  ;;  %v700_v62 = vmax.f32 %v684_v48, 0.0  ;;  %v737_v38 = vpop.permute.xlu1 %736 }
 0x10a   : > { %v701_v59 = vmax.f32 %v685_v51, 0.0  ;;  %v703_v60 = vmax.f32 %v687_v52, 0.0 }
 0x10b   : > { %v702_v63 = vmax.f32 %v686_v55, 0.0  ;;  %v704_v0 = vmax.f32 %v688_v56, 0.0 }
 0x10c   : > { %v717_v2 = vpack.c.bf16 %v701_v59, %v697_v57  ;;  %v719_v3 = vpack.c.bf16 %v703_v60, %v699_v58 }
 0x10d   : > { %v718_v4 = vpack.c.bf16 %v702_v63, %v698_v61  ;;  %v720_v5 = vpack.c.bf16 %v704_v0, %v700_v62  ;;  %v555_v6 = vpop.f32.mrb[4].mxu0  ;;  %v628_v7 = vpop.f32.mrb[4].mxu1 }
 0x10e   : > { %v689_v9 = vadd.f32 %v674_v40, %v555_v6  ;;  %v691_v10 = vadd.f32 %v674_v40, %v628_v7  ;;  %v557_v11 = vpop.f32.mrb[5].mxu0  ;;  %v630_v12 = vpop.f32.mrb[5].mxu1 }
 0x10f   : > { %v690_v13 = vadd.f32 %v674_v40, %v557_v11  ;;  %v692_v14 = vadd.f32 %v674_v40, %v630_v12  ;;  %v559_v15 = vpop.f32.mrb[6].mxu0  ;;  %v632_v16 = vpop.f32.mrb[6].mxu1  ;;  %765 = vmatprep.subr.bf16.mxu0 %v718_v4  ;;  %818 = vmatprep.subr.bf16.mxu1 %v720_v5 }
 0x110   : > { %v693_v17 = vadd.f32 %v679_v1, %v559_v15  ;;  %v695_v18 = vadd.f32 %v679_v1, %v632_v16  ;;  %v561_v19 = vpop.f32.mrb[7].mxu0  ;;  %v634_v20 = vpop.f32.mrb[7].mxu1  ;;  %766 = vmatpush1.bf16.msra.mxu0 %v717_v2  ;;  %819 = vmatpush1.bf16.msra.mxu1 %v719_v3  ;;  %v705_v23 = vmax.f32 %v689_v9, 0.0  ;;  %v707_v24 = vmax.f32 %v691_v10, 0.0 }
 0x111   : > { %v694_v21 = vadd.f32 %v679_v1, %v561_v19  ;;  %v696_v22 = vadd.f32 %v679_v1, %v634_v20  ;;  %v706_v27 = vmax.f32 %v690_v13, 0.0  ;;  %v708_v28 = vmax.f32 %v692_v14, 0.0  ;;  %v742_v63 = vpop.permute.xlu0 %741  ;;  %v747_v0 = vpop.permute.xlu1 %746 }
 0x112   : > { %v709_v25 = vmax.f32 %v693_v17, 0.0  ;;  %v711_v26 = vmax.f32 %v695_v18, 0.0 }
 0x113   : > { %v710_v29 = vmax.f32 %v694_v21, 0.0  ;;  %v712_v30 = vmax.f32 %v696_v22, 0.0 }
 0x114   : > { %v721_v31 = vpack.c.bf16 %v709_v25, %v705_v23  ;;  %v723_v32 = vpack.c.bf16 %v711_v26, %v707_v24 }
 0x115   : > { %v722_v33 = vpack.c.bf16 %v710_v29, %v706_v27  ;;  %v724_v34 = vpack.c.bf16 %v712_v30, %v708_v28 }
 0x117   : > { %767 = vmatprep.subr.bf16.mxu0 %v722_v33  ;;  %820 = vmatprep.subr.bf16.mxu1 %v724_v34  ;;  %v1630_v34 = vld [vmem:[%s2034_s5] sm:$0xff]  }
 0x118   : > { %768 = vmatpush1.bf16.msra.mxu0 %v721_v31  ;;  %821 = vmatpush1.bf16.msra.mxu1 %v723_v32 }
 0x11b   : > { %1526 = vmatmul.mubr.msk.bf16.vlgmr.msra.gmra.mrb[16].mxu0 %vm498_vm0, %v1628_v35  ;;  %1528 = vmatmul.mubr.msk.bf16.vlgmr.msra.gmra.mrb[16].mxu1 %vm498_vm0, %v1628_v35  ;;  %v1631_v35 = vld [vmem:[%s2034_s5 + $0x8] sm:$0xff]  }
 0x11c   : > { %807 = vmatprep.mubr.bf16.mxu0 %v1714_v8  ;;  %860 = vmatprep.mubr.bf16.mxu1 %v1714_v8 }
 0x123   : > { %1527 = vmatmul.mubr.msk.bf16.gmra.mrb[20].mxu0 %vm498_vm0, %v1629_v36  ;;  %1529 = vmatmul.mubr.msk.bf16.gmra.mrb[20].mxu1 %vm498_vm0, %v1629_v36  ;;  %v1028_v36 = vpop.permute.xlu0 %1027 }
 0x124   : > { %947 = vmatprep.mubr.bf16.mxu0 %v1714_v8  ;;  %1000 = vmatprep.mubr.bf16.mxu1 %v1714_v8 }
 0x1ee   : > { %v799_v39 = vpop.f32.mrb[16].mxu0  ;;  %v852_v40 = vpop.f32.mrb[16].mxu1 }
 0x1ef   : > { %v800_v41 = vadd.f32 %v799_v39, %v732_v37  ;;  %v853_v42 = vadd.f32 %v852_v40, %v732_v37  ;;  %v801_v43 = vpop.f32.mrb[17].mxu0  ;;  %v854_v44 = vpop.f32.mrb[17].mxu1 }
 0x1f0   : > { %v802_v45 = vadd.f32 %v801_v43, %v732_v37  ;;  %v855_v46 = vadd.f32 %v854_v44, %v732_v37  ;;  %v803_v47 = vpop.f32.mrb[18].mxu0  ;;  %v856_v48 = vpop.f32.mrb[18].mxu1 }
 0x1f1   : > { %v804_v49 = vadd.f32 %v803_v47, %v737_v38  ;;  %v857_v50 = vadd.f32 %v856_v48, %v737_v38  ;;  %v805_v51 = vpop.f32.mrb[19].mxu0  ;;  %v858_v52 = vpop.f32.mrb[19].mxu1  ;;  %v871_v55 = vmax.f32 %v800_v41, 0.0  ;;  %v873_v56 = vmax.f32 %v853_v42, 0.0 }
 0x1f2   : > { %v806_v53 = vadd.f32 %v805_v51, %v737_v38  ;;  %v859_v54 = vadd.f32 %v858_v52, %v737_v38  ;;  %v872_v59 = vmax.f32 %v802_v45, 0.0  ;;  %v874_v60 = vmax.f32 %v855_v46, 0.0  ;;  %v1033_v37 = vpop.permute.xlu1 %1032 }
 0x1f3   : > { %v875_v57 = vmax.f32 %v804_v49, 0.0  ;;  %v877_v58 = vmax.f32 %v857_v50, 0.0 }
 0x1f4   : > { %v876_v61 = vmax.f32 %v806_v53, 0.0  ;;  %v878_v62 = vmax.f32 %v859_v54, 0.0 }
 0x1f5   : > { %v891_v1 = vpack.c.bf16 %v875_v57, %v871_v55  ;;  %v893_v2 = vpack.c.bf16 %v877_v58, %v873_v56 }
 0x1f6   : > { %v892_v3 = vpack.c.bf16 %v876_v61, %v872_v59  ;;  %v894_v4 = vpack.c.bf16 %v878_v62, %v874_v60  ;;  %v809_v5 = vpop.f32.mrb[20].mxu0  ;;  %v862_v6 = vpop.f32.mrb[20].mxu1 }
 0x1f7   : > { %v810_v7 = vadd.f32 %v809_v5, %v742_v63  ;;  %v863_v9 = vadd.f32 %v862_v6, %v742_v63  ;;  %v811_v10 = vpop.f32.mrb[21].mxu0  ;;  %v864_v11 = vpop.f32.mrb[21].mxu1 }
 0x1f8   : > { %v812_v12 = vadd.f32 %v811_v10, %v742_v63  ;;  %v865_v13 = vadd.f32 %v864_v11, %v742_v63  ;;  %v813_v14 = vpop.f32.mrb[22].mxu0  ;;  %v866_v15 = vpop.f32.mrb[22].mxu1  ;;  %915 = vmatprep.subr.bf16.mxu0 %v892_v3  ;;  %968 = vmatprep.subr.bf16.mxu1 %v894_v4 }
 0x1f9   : > { %v814_v16 = vadd.f32 %v813_v14, %v747_v0  ;;  %v867_v17 = vadd.f32 %v866_v15, %v747_v0  ;;  %v815_v18 = vpop.f32.mrb[23].mxu0  ;;  %v868_v19 = vpop.f32.mrb[23].mxu1  ;;  %916 = vmatpush1.bf16.msra.mxu0 %v891_v1  ;;  %969 = vmatpush1.bf16.msra.mxu1 %v893_v2  ;;  %v879_v22 = vmax.f32 %v810_v7, 0.0  ;;  %v881_v23 = vmax.f32 %v863_v9, 0.0 }
 0x1fa   : > { %v816_v20 = vadd.f32 %v815_v18, %v747_v0  ;;  %v869_v21 = vadd.f32 %v868_v19, %v747_v0  ;;  %v880_v26 = vmax.f32 %v812_v12, 0.0  ;;  %v882_v27 = vmax.f32 %v865_v13, 0.0  ;;  %v1038_v62 = vpop.permute.xlu0 %1037  ;;  %v1043_v63 = vpop.permute.xlu1 %1042 }
 0x1fb   : > { %v883_v24 = vmax.f32 %v814_v16, 0.0  ;;  %v885_v25 = vmax.f32 %v867_v17, 0.0 }
 0x1fc   : > { %v884_v28 = vmax.f32 %v816_v20, 0.0  ;;  %v886_v29 = vmax.f32 %v869_v21, 0.0 }
 0x1fd   : > { %v895_v30 = vpack.c.bf16 %v883_v24, %v879_v22  ;;  %v897_v31 = vpack.c.bf16 %v885_v25, %v881_v23 }
 0x1fe   : > { %v896_v32 = vpack.c.bf16 %v884_v28, %v880_v26  ;;  %v898_v33 = vpack.c.bf16 %v886_v29, %v882_v27 }
 0x200   : > { %917 = vmatprep.subr.bf16.mxu0 %v896_v32  ;;  %970 = vmatprep.subr.bf16.mxu1 %v898_v33  ;;  %v1632_v33 = vld [vmem:[%s2036_s7] sm:$0xff]  }
 0x201   : > { %918 = vmatpush1.bf16.msra.mxu0 %v895_v30  ;;  %971 = vmatpush1.bf16.msra.mxu1 %v897_v31 }
 0x204   : > { %1532 = vmatmul.mubr.msk.bf16.vlgmr.msra.gmra.mrb[8].mxu0 %vm498_vm0, %v1630_v34  ;;  %1534 = vmatmul.mubr.msk.bf16.vlgmr.msra.gmra.mrb[8].mxu1 %vm498_vm0, %v1630_v34  ;;  %v1633_v34 = vld [vmem:[%s2036_s7 + $0x8] sm:$0xff]  }
 0x205   : > { %957 = vmatprep.mubr.bf16.mxu0 %v1714_v8  ;;  %1010 = vmatprep.mubr.bf16.mxu1 %v1714_v8 }
 0x20c   : > { %1533 = vmatmul.mubr.msk.bf16.gmra.mrb[12].mxu0 %vm498_vm0, %v1631_v35  ;;  %1535 = vmatmul.mubr.msk.bf16.gmra.mrb[12].mxu1 %vm498_vm0, %v1631_v35  ;;  %v1096_v35 = vpop.permute.xlu0 %1095 }
 0x20d   : > { %1161 = vmatprep.mubr.bf16.mxu0 %v1714_v8  ;;  %1214 = vmatprep.mubr.bf16.mxu1 %v1714_v8 }
 0x2d7   : > { %v949_v38 = vpop.f32.mrb[8].mxu0  ;;  %v1002_v39 = vpop.f32.mrb[8].mxu1 }
 0x2d8   : > { %v1045_v40 = vadd.f32 %v1028_v36, %v949_v38  ;;  %v1047_v41 = vadd.f32 %v1028_v36, %v1002_v39  ;;  %v951_v42 = vpop.f32.mrb[9].mxu0  ;;  %v1004_v43 = vpop.f32.mrb[9].mxu1 }
 0x2d9   : > { %v1046_v44 = vadd.f32 %v1028_v36, %v951_v42  ;;  %v1048_v45 = vadd.f32 %v1028_v36, %v1004_v43  ;;  %v953_v46 = vpop.f32.mrb[10].mxu0  ;;  %v1006_v47 = vpop.f32.mrb[10].mxu1 }
 0x2da   : > { %v1049_v48 = vadd.f32 %v1033_v37, %v953_v46  ;;  %v1051_v49 = vadd.f32 %v1033_v37, %v1006_v47  ;;  %v955_v50 = vpop.f32.mrb[11].mxu0  ;;  %v1008_v51 = vpop.f32.mrb[11].mxu1  ;;  %v1061_v54 = vmax.f32 %v1045_v40, 0.0  ;;  %v1063_v55 = vmax.f32 %v1047_v41, 0.0 }
 0x2db   : > { %v1050_v52 = vadd.f32 %v1033_v37, %v955_v50  ;;  %v1052_v53 = vadd.f32 %v1033_v37, %v1008_v51  ;;  %v1062_v58 = vmax.f32 %v1046_v44, 0.0  ;;  %v1064_v59 = vmax.f32 %v1048_v45, 0.0  ;;  %v1101_v36 = vpop.permute.xlu1 %1100 }
 0x2dc   : > { %v1065_v56 = vmax.f32 %v1049_v48, 0.0  ;;  %v1067_v57 = vmax.f32 %v1051_v49, 0.0 }
 0x2dd   : > { %v1066_v60 = vmax.f32 %v1050_v52, 0.0  ;;  %v1068_v61 = vmax.f32 %v1052_v53, 0.0 }
 0x2de   : > { %v1081_v0 = vpack.c.bf16 %v1065_v56, %v1061_v54  ;;  %v1083_v1 = vpack.c.bf16 %v1067_v57, %v1063_v55 }
 0x2df   : > { %v1082_v2 = vpack.c.bf16 %v1066_v60, %v1062_v58  ;;  %v1084_v3 = vpack.c.bf16 %v1068_v61, %v1064_v59  ;;  %v959_v4 = vpop.f32.mrb[12].mxu0  ;;  %v1012_v5 = vpop.f32.mrb[12].mxu1 }
 0x2e0   : > { %v1053_v6 = vadd.f32 %v1038_v62, %v959_v4  ;;  %v1055_v7 = vadd.f32 %v1038_v62, %v1012_v5  ;;  %v961_v9 = vpop.f32.mrb[13].mxu0  ;;  %v1014_v10 = vpop.f32.mrb[13].mxu1 }
 0x2e1   : > { %v1054_v11 = vadd.f32 %v1038_v62, %v961_v9  ;;  %v1056_v12 = vadd.f32 %v1038_v62, %v1014_v10  ;;  %v963_v13 = vpop.f32.mrb[14].mxu0  ;;  %v1016_v14 = vpop.f32.mrb[14].mxu1  ;;  %1129 = vmatprep.subr.bf16.mxu0 %v1082_v2  ;;  %1182 = vmatprep.subr.bf16.mxu1 %v1084_v3 }
 0x2e2   : > { %v1057_v15 = vadd.f32 %v1043_v63, %v963_v13  ;;  %v1059_v16 = vadd.f32 %v1043_v63, %v1016_v14  ;;  %v965_v17 = vpop.f32.mrb[15].mxu0  ;;  %v1018_v18 = vpop.f32.mrb[15].mxu1  ;;  %1130 = vmatpush1.bf16.msra.mxu0 %v1081_v0  ;;  %1183 = vmatpush1.bf16.msra.mxu1 %v1083_v1  ;;  %v1069_v21 = vmax.f32 %v1053_v6, 0.0  ;;  %v1071_v22 = vmax.f32 %v1055_v7, 0.0 }
 0x2e3   : > { %v1058_v19 = vadd.f32 %v1043_v63, %v965_v17  ;;  %v1060_v20 = vadd.f32 %v1043_v63, %v1018_v18  ;;  %v1070_v25 = vmax.f32 %v1054_v11, 0.0  ;;  %v1072_v26 = vmax.f32 %v1056_v12, 0.0  ;;  %v1106_v60 = vpop.permute.xlu0 %1105  ;;  %v1111_v61 = vpop.permute.xlu1 %1110 }
 0x2e4   : > { %v1073_v23 = vmax.f32 %v1057_v15, 0.0  ;;  %v1075_v24 = vmax.f32 %v1059_v16, 0.0 }
 0x2e5   : > { %v1074_v27 = vmax.f32 %v1058_v19, 0.0  ;;  %v1076_v28 = vmax.f32 %v1060_v20, 0.0 }
 0x2e6   : > { %v1085_v29 = vpack.c.bf16 %v1073_v23, %v1069_v21  ;;  %v1087_v30 = vpack.c.bf16 %v1075_v24, %v1071_v22 }
 0x2e7   : > { %v1086_v31 = vpack.c.bf16 %v1074_v27, %v1070_v25  ;;  %v1088_v32 = vpack.c.bf16 %v1076_v28, %v1072_v26 }
 0x2e9   : > { %1131 = vmatprep.subr.bf16.mxu0 %v1086_v31  ;;  %1184 = vmatprep.subr.bf16.mxu1 %v1088_v32  ;;  %v1251_v31 = vld [vmem:[%s2038_s9] sm:$0x3]  ;;  %v1264_v32 = vpop.permute.xlu0 %1263 }
 0x2ea   : > { %1132 = vmatpush1.bf16.msra.mxu0 %v1085_v29  ;;  %1185 = vmatpush1.bf16.msra.mxu1 %v1087_v30 }
 0x2ed   : > { %1538 = vmatmul.mubr.msk.bf16.vlgmr.msra.gmra.mrb[24].mxu0 %vm498_vm0, %v1632_v33  ;;  %1540 = vmatmul.mubr.msk.bf16.vlgmr.msra.gmra.mrb[24].mxu1 %vm498_vm0, %v1632_v33 }
 0x2ee   : > { %1171 = vmatprep.mubr.bf16.mxu0 %v1714_v8  ;;  %1224 = vmatprep.mubr.bf16.mxu1 %v1714_v8 }
 0x2f5   : > { %1539 = vmatmul.mubr.msk.bf16.gmra.mrb[28].mxu0 %vm498_vm0, %v1633_v34  ;;  %1541 = vmatmul.mubr.msk.bf16.gmra.mrb[28].mxu1 %vm498_vm0, %v1633_v34 }
 0x2f6   : > { %1301 = vmatprep.mubr.bf16.mxu0 %v1714_v8  ;;  %1342 = vmatprep.mubr.bf16.mxu1 %v1714_v8 }
 0x3c0   : > { %v1163_v37 = vpop.f32.mrb[24].mxu0  ;;  %v1216_v38 = vpop.f32.mrb[24].mxu1 }
 0x3c1   : > { %v1164_v39 = vadd.f32 %v1163_v37, %v1096_v35  ;;  %v1217_v40 = vadd.f32 %v1216_v38, %v1096_v35  ;;  %v1165_v41 = vpop.f32.mrb[25].mxu0  ;;  %v1218_v42 = vpop.f32.mrb[25].mxu1 }
 0x3c2   : > { %v1166_v43 = vadd.f32 %v1165_v41, %v1096_v35  ;;  %v1219_v44 = vadd.f32 %v1218_v42, %v1096_v35  ;;  %v1167_v45 = vpop.f32.mrb[26].mxu0  ;;  %v1220_v46 = vpop.f32.mrb[26].mxu1 }
 0x3c3   : > { %v1168_v47 = vadd.f32 %v1167_v45, %v1101_v36  ;;  %v1221_v48 = vadd.f32 %v1220_v46, %v1101_v36  ;;  %v1169_v49 = vpop.f32.mrb[27].mxu0  ;;  %v1222_v50 = vpop.f32.mrb[27].mxu1  ;;  %v1235_v53 = vmax.f32 %v1164_v39, 0.0  ;;  %v1237_v8 = vmax.f32 %v1217_v40, 0.0 }
 0x3c4   : > { %v1170_v51 = vadd.f32 %v1169_v49, %v1101_v36  ;;  %v1223_v52 = vadd.f32 %v1222_v50, %v1101_v36  ;;  %v1236_v56 = vmax.f32 %v1166_v43, 0.0  ;;  %v1238_v57 = vmax.f32 %v1219_v44, 0.0 }
 0x3c5   : > { %v1239_v54 = vmax.f32 %v1168_v47, 0.0  ;;  %v1241_v55 = vmax.f32 %v1221_v48, 0.0 }
 0x3c6   : > { %v1240_v58 = vmax.f32 %v1170_v51, 0.0  ;;  %v1242_v59 = vmax.f32 %v1223_v52, 0.0 }
 0x3c7   : > { %v1252_v62 = vpack.c.bf16 %v1239_v54, %v1235_v53  ;;  %v1254_v63 = vpack.c.bf16 %v1241_v55, %v1237_v8 }
 0x3c8   : > { %v1253_v0 = vpack.c.bf16 %v1240_v58, %v1236_v56  ;;  %v1255_v1 = vpack.c.bf16 %v1242_v59, %v1238_v57  ;;  %v1173_v2 = vpop.f32.mrb[28].mxu0  ;;  %v1226_v3 = vpop.f32.mrb[28].mxu1 }
 0x3c9   : > { %v1174_v4 = vadd.f32 %v1173_v2, %v1106_v60  ;;  %v1227_v5 = vadd.f32 %v1226_v3, %v1106_v60  ;;  %v1175_v6 = vpop.f32.mrb[29].mxu0  ;;  %v1228_v7 = vpop.f32.mrb[29].mxu1 }
 0x3ca   : > { %v1176_v9 = vadd.f32 %v1175_v6, %v1106_v60  ;;  %v1229_v10 = vadd.f32 %v1228_v7, %v1106_v60  ;;  %v1177_v11 = vpop.f32.mrb[30].mxu0  ;;  %v1230_v12 = vpop.f32.mrb[30].mxu1  ;;  %1269 = vmatprep.subr.bf16.mxu0 %v1253_v0  ;;  %1310 = vmatprep.subr.bf16.mxu1 %v1255_v1  ;;  %v1715_v60 = vmov 1983009808  }
 0x3cb   : > { %v1178_v13 = vadd.f32 %v1177_v11, %v1111_v61  ;;  %v1231_v14 = vadd.f32 %v1230_v12, %v1111_v61  ;;  %v1179_v15 = vpop.f32.mrb[31].mxu0  ;;  %v1232_v16 = vpop.f32.mrb[31].mxu1  ;;  %1270 = vmatpush1.bf16.msra.mxu0 %v1252_v62  ;;  %1311 = vmatpush1.bf16.msra.mxu1 %v1254_v63  ;;  %v1243_v19 = vmax.f32 %v1174_v4, 0.0  ;;  %v1245_v20 = vmax.f32 %v1227_v5, 0.0 }
 0x3cc   : > { %v1180_v17 = vadd.f32 %v1179_v15, %v1111_v61  ;;  %v1233_v18 = vadd.f32 %v1232_v16, %v1111_v61  ;;  %v1244_v23 = vmax.f32 %v1176_v9, 0.0  ;;  %v1246_v24 = vmax.f32 %v1229_v10, 0.0 }
 0x3cd   : > { %v1247_v21 = vmax.f32 %v1178_v13, 0.0  ;;  %v1249_v22 = vmax.f32 %v1231_v14, 0.0  ;;  %v1382_v61 = vunpack.c.l.s4 %v1715_v60  ;;  %v1384_v62 = vlaneseq  ;;  %v1412_v13 = vld [vmem:[%s418_s29] sm:$0xff] }
 0x3ce   : > { %v1248_v25 = vmax.f32 %v1180_v17, 0.0  ;;  %v1250_v26 = vmax.f32 %v1233_v18, 0.0 }
 0x3cf   : > { %v1256_v27 = vpack.c.bf16 %v1247_v21, %v1243_v19  ;;  %v1258_v28 = vpack.c.bf16 %v1249_v22, %v1245_v20  ;;  %v1383_v1 = vunpack.c.0.s8 %v1382_v61  ;;  %v1385_v2 = vshrl.u32 %v1384_v62, 7 }
 0x3d0   : > { %v1257_v29 = vpack.c.bf16 %v1248_v25, %v1244_v23  ;;  %v1259_v30 = vpack.c.bf16 %v1250_v26, %v1246_v24 }
 0x3d1   : > { %v1386_v5 = vsub.s32 %v1383_v1, %v1385_v2 }
 0x3d2   : > { %1271 = vmatprep.subr.bf16.mxu0 %v1257_v29  ;;  %1312 = vmatprep.subr.bf16.mxu1 %v1259_v30 }
 0x3d3   : > { %1272 = vmatpush1.bf16.msra.mxu0 %v1256_v27  ;;  %1313 = vmatpush1.bf16.msra.mxu1 %v1258_v28 }
 0x3d6   : > { %1542 = vmatmul.mubr.msk.bf16.vlgmr.msra.gmra.mrb[32].mxu0 %vm498_vm0, %v1251_v31  ;;  %1543 = vmatmul.mubr.msk.bf16.vlgmr.msra.gmra.mrb[32].mxu1 %vm498_vm0, %v1251_v31 }
 0x4a9   : > { %v1303_v33 = vpop.f32.mrb[32].mxu0  ;;  %v1344_v34 = vpop.f32.mrb[32].mxu1 }
 0x4aa   : > { %v1304_v35 = vadd.f32 %v1303_v33, %v1264_v32  ;;  %v1345_v36 = vadd.f32 %v1344_v34, %v1264_v32  ;;  %v1305_v37 = vpop.f32.mrb[33].mxu0  ;;  %v1346_v38 = vpop.f32.mrb[33].mxu1 }
 0x4ab   : > { %v1306_v39 = vadd.f32 %v1305_v37, %v1264_v32  ;;  %v1347_v40 = vadd.f32 %v1346_v38, %v1264_v32  ;;  %v1307_v41 = vpop.f32.mrb[34].mxu0  ;;  %v1348_v42 = vpop.f32.mrb[34].mxu1 }
 0x4ac   : > { %v1351_v43 = vsub.f32 0.0, %v1304_v35  ;;  %v1353_v44 = vsub.f32 0.0, %v1345_v36  ;;  %v1308_v45 = vpop.f32.mrb[35].mxu0  ;;  %v1349_v46 = vpop.f32.mrb[35].mxu1 }
 0x4ad   : > { %v1352_v47 = vsub.f32 0.0, %v1306_v39  ;;  %v1354_v48 = vsub.f32 0.0, %v1347_v40 }
 0x4ae   : > { %v1355_v49 = vmul.f32 1.442695, %v1351_v43  ;;  %v1359_v50 = vmul.f32 1.442695, %v1353_v44 }
 0x4af   : > { %v1357_v51 = vmul.f32 1.442695, %v1352_v47  ;;  %v1361_v52 = vmul.f32 1.442695, %v1354_v48 }
 0x4b0   : > { %1634 = vpow2.f32 %v1355_v49 }
 0x4b1   : > { %1636 = vpow2.f32 %v1359_v50 }
 0x4b2   : > { %1638 = vpow2.f32 %v1357_v51 }
 0x4b3   : > { %1640 = vpow2.f32 %v1361_v52 }
 0x4ba   : > { %v1635_v53 = vpop.eup %1634 }
 0x4bb   : > { %v1637_v8 = vpop.eup %1636  ;;  %v1363_v54 = vadd.f32 1.0, %v1635_v53 }
 0x4bc   : > { %v1639_v55 = vpop.eup %1638  ;;  %v1365_v56 = vadd.f32 1.0, %v1637_v8 }
 0x4bd   : > { %v1641_v57 = vpop.eup %1640  ;;  %1642 = vrcp.f32 %v1363_v54  ;;  %v1364_v58 = vadd.f32 1.0, %v1639_v55 }
 0x4be   : > { %1644 = vrcp.f32 %v1365_v56  ;;  %v1366_v59 = vadd.f32 1.0, %v1641_v57 }
 0x4bf   : > { %1646 = vrcp.f32 %v1364_v58 }
 0x4c0   : > { %1648 = vrcp.f32 %v1366_v59 }
 0x4c7   : > { %v1643_v3 = vpop.eup %1642 }
 0x4c8   : > { %v1645_v4 = vpop.eup %1644 }
 0x4c9   : > { %v1647_v6 = vpop.eup %1646 }
 0x4ca   : > { %v1649_v7 = vpop.eup %1648  ;;  %v1544_v9 = vpack.c.bf16 %v1647_v6, %v1643_v3 }
 0x4cb   : > { %v1545_v10 = vpack.c.bf16 %v1649_v7, %v1645_v4 }
 0x4cc   : > { %v1387_v11 = vrot.slane %v1544_v9, %v1386_v5 }
 0x4cd   : > { %v1394_v12 = vrot.slane %v1545_v10, %v1386_v5 }
 0x4cf   : > { %v1395_v14 = vcombine.low %v1387_v11, %v1394_v12 }
 0x4d1   : > { %v1413_v15 = vsel %vm1411_vm15, %v1395_v14, %v1412_v13 }
 0x4d2   : > { %1414 = vst [vmem:[%s418_s29] sm:$0xff] %v1413_v15 }
 0x4d3   : > { %1663 = shalt.err (!%p1660_p5)
}
 0x4d4   : > { %s1664_s22 = scalar_lea.hbm %s1985_s14, 128  ;;  %s1668_s12 = scalar_lea.hbm %s2040_s11, 256 }
 0x4d5   : > { %p1665_p7 = scmp.ne.s32.totalorder %s1985_s14, %s1664_s22  ;;  %p1669_p12 = scmp.lt.u32.totalorder %s1985_s14, %s2040_s11 }
 0x4d6   : > { %p1670_p13 = scmp.lt.u32.totalorder %s1668_s12, %s1664_s22  ;;  %p1672_p1 = scmp.lt.u32.totalorder %s1664_s22, %s1985_s14 }
 0x4d7   : > { %p1666_p10 = pnand %p1665_p7, %p1815_p6 }
 0x4d8   : > { %p1671_p0 = por %p1670_p13, %p1669_p12 }
 0x4d9   : > { %p1667_p11 = pneg %p1666_p10 }
 0x4da   : > { %p1673_p2 = por %p1672_p1, %p1671_p0 }
 0x4dc   : > { %p1674_p3 = pnand %p1673_p2, %p1667_p11 }
 0x4de   : > { %1677 = shalt.err (!%p1674_p3)
}
 0x4df   : > { %1569 = dma.vmem_to_hbm [thread:$0]  (%p1815_p6), %s1987_s30, 128, %s1985_s14, %s1416_s15  }
 0x4e0 PF: > { %s1442_s0 = sand.u32 1, %s1700_s17   ;;  %p1572_p4 = pnand %p1497_p9, %p1819_p8 }
 0x4e1   : > { %s1443_s16 = scalar_lea.sflag [#allocation4], %s1442_s0 }
 0x4e2   : > { %1695 = dma.done.wait (!%p1572_p4), %s1443_s16, 128  }
 0x4e3   : > { %1697 = vsyncadd (!%p1572_p4), %s1443_s16, 4294967168  ;;  %p21_p5 = scmp.ge.s32.totalorder %s1800_s23, 4   ;;  %s2051_s17 = smov %s1704_s18 }
 0x4e4   : > { %s2052_s18 = smov %s1708_s19  ;;  %s2053_s19 = smov %s1813_s26 }
 0x4e5   : > { %s2054_s20 = smov %s1800_s23  ;;  %23 = sbr.rel (!%p21_p5) target bundleno = 5 (0x5), region = 127 }
 0x4ec   :  { %1448 = vsyncpa [#allocation4], 1 }
 0x4ed   :  { %1450 = vsyncpa [#allocation4 + $0x1], 1 }

</bundles_post_ra>
